<compile_context>
chip_gen: v7x
topology: tpu7x:2x2x1
jax: 0.10.0
libtpu: 0.0.40
codegen_flags: <defaults>
</compile_context>

<pallas_src>
import math

import jax
import jax.numpy as jnp
import numpy as np
from jax.experimental import pallas as pl
from jax.experimental.pallas import tpu as pltpu


def _cdiv(a, b):
    return -(-a // b)


def pos_enc_kernel(x_ref, pe_ref, o_ref):
    # Broadcast add on the VPU (pe block has a leading size-1 batch dim).
    o_ref[...] = x_ref[...] + pe_ref[...]
    # TODO(synk): training-mode dropout omitted (matches eval mode / p=0); if
    # needed, fold it in here with pltpu.prng_seed/prng_random_bits + jnp.where
    # rather than a second full HBM pass.


def make_pe(seq_len, d_model, dtype=jnp.float32):
    """Exactly reproduces the torch registered-buffer construction."""
    position = jnp.arange(seq_len, dtype=jnp.float32)[:, None]               # (S, 1)
    div_term = jnp.exp(jnp.arange(0, d_model, 2, dtype=jnp.float32)
                       * (-math.log(10000.0) / d_model))                     # (D/2,)
    angles = position * div_term                                             # (S, D/2)
    pe = jnp.zeros((seq_len, d_model), jnp.float32)
    pe = pe.at[:, 0::2].set(jnp.sin(angles))
    pe = pe.at[:, 1::2].set(jnp.cos(angles))
    return pe[None].astype(dtype)                                            # (1, S, D)


def _choose_blocks(rows, cols, itemsize, outer_steps, total_bytes):
    """Pick (row_block, col_block, vmem_limit) for a 2-D (sublane, lane) tile."""
    lane = 128
    sub = {4: 8, 2: 16, 1: 32}.get(itemsize, 8)

    # Per-generation VMEM; conservative fallback if the query is unavailable.
    vmem_bytes = 64 << 20
    try:
        vmem_bytes = int(pltpu.get_tpu_info().vmem_capacity_bytes)
    except Exception:
        pass
    # Budget for live block data: keeps us safe on v5e (16 MiB scoped default),
    # v6e (32 MiB default / 128 MiB physical) and v7x (64 MiB physical).
    budget = min(24 << 20, max(8 << 20, vmem_bytes // 4))
    # x + out double-buffered (4 blocks) + pe (up to 2 blocks of the same size).
    per_block = budget // 6

    # Lane (last) axis: must be a multiple of 128 or the full axis.
    if cols % lane != 0 or cols * itemsize * sub <= per_block:
        col_block = cols
    else:
        col_block = max(lane, (per_block // (sub * itemsize)) // lane * lane)
        col_block = min(col_block, cols)

    # Sublane (second-last) axis: multiple of the sublane tile or the full axis.
    if rows % sub != 0:
        row_block = rows
    else:
        row_block = max(sub, (per_block // max(col_block * itemsize, 1)) // sub * sub)
        row_block = min(row_block, rows)

    # Force >= 2 grid steps on large inputs so both v7x TensorCores get work
    # ("parallel" semantics). No effect on single-TC v5e/v6e.
    steps = outer_steps * _cdiv(rows, row_block) * _cdiv(cols, col_block)
    if (steps < 2 and total_bytes >= (1 << 20)
            and rows % sub == 0 and rows >= 2 * sub):
        row_block = max(sub, _cdiv(_cdiv(rows, 2), sub) * sub)

    vmem_limit = int(min(vmem_bytes, max(32 << 20, 2 * budget)))
    return row_block, col_block, vmem_limit


def _call_2d(x2, pe2, row_block, n_block, vmem_limit):
    """x2: (R, N), pe2: (1, N)."""
    R, N = x2.shape
    grid = (_cdiv(R, row_block), _cdiv(N, n_block))
    return pl.pallas_call(
        pos_enc_kernel,
        out_shape=jax.ShapeDtypeStruct((R, N), x2.dtype),
        grid_spec=pltpu.PrefetchScalarGridSpec(
            num_scalar_prefetch=0,
            grid=grid,
            in_specs=[
                pl.BlockSpec((row_block, n_block), lambda i, j: (i, j)),   # x tile
                pl.BlockSpec((1, n_block), lambda i, j: (0, j)),           # pe tile
            ],
            out_specs=pl.BlockSpec((row_block, n_block), lambda i, j: (i, j)),
        ),
        input_output_aliases={0: 0},
        compiler_params=pltpu.CompilerParams(
            dimension_semantics=("parallel", "parallel"),
            vmem_limit_bytes=vmem_limit,
        ),
    )(x2, pe2)


def _call_3d(x, pe_s, s_block, d_block, vmem_limit):
    """x: (B, S, D), pe_s: (1, S, D), D a multiple of 128 (already lane-dense)."""
    B, S, D = x.shape
    grid = (B, _cdiv(S, s_block), _cdiv(D, d_block))
    return pl.pallas_call(
        pos_enc_kernel,
        out_shape=jax.ShapeDtypeStruct((B, S, D), x.dtype),
        grid_spec=pltpu.PrefetchScalarGridSpec(
            num_scalar_prefetch=0,
            grid=grid,
            in_specs=[
                pl.BlockSpec((1, s_block, d_block), lambda b, s, d: (b, s, d)),
                pl.BlockSpec((1, s_block, d_block), lambda b, s, d: (0, s, d)),
            ],
            out_specs=pl.BlockSpec((1, s_block, d_block), lambda b, s, d: (b, s, d)),
        ),
        input_output_aliases={0: 0},
        compiler_params=pltpu.CompilerParams(
            dimension_semantics=("parallel", "parallel", "parallel"),
            vmem_limit_bytes=vmem_limit,
        ),
    )(x, pe_s)


def positional_encoding(x, pe, *, force_pallas=False, min_pallas_bytes=256 * 1024):
    """x: (B, S, D); pe: (1, seq_len, D) with seq_len >= S."""
    B, S, D = x.shape
    # NOTE: in a real module, cache pe_s per (S, dtype) at init instead of per call.
    pe_s = pe[:, :S, :].astype(x.dtype)

    itemsize = x.dtype.itemsize
    total_bytes = x.size * itemsize
    if not force_pallas and total_bytes < min_pallas_bytes:
        # Tiny inputs: fused XLA add beats pallas_call launch + pipeline overhead.
        return x + pe_s

    if D % 128 == 0:
        # Last dim is already lane-dense: no reshape, no relayout copy.
        s_block, d_block, vmem_limit = _choose_blocks(
            S, D, itemsize, outer_steps=B, total_bytes=total_bytes)
        return _call_3d(x, pe_s, s_block, d_block, vmem_limit)

    # Narrow / unaligned d_model (e.g. 32): flatten (S, D) -> S*D for lane-dense
    # full-width stores instead of masked partial stores.
    N = S * D
    x2 = x.reshape(B, N)
    pe2 = pe_s.reshape(1, N)
    row_block, n_block, vmem_limit = _choose_blocks(
        B, N, itemsize, outer_steps=1, total_bytes=total_bytes)
    out = _call_2d(x2, pe2, row_block, n_block, vmem_limit)
    return out.reshape(B, S, D)


def ref_forward(x, pe):
    """Plain-JAX reference reproducing the PyTorch forward (dropout in eval mode)."""
    S = x.shape[1]
    return x + pe[:, :S, :]


if __name__ == "__main__":
    # Case 1: module-spec shapes (batch=2, seq=8, d_model=32) -> flattened
    # lane-dense path. Force the Pallas kernel (bypassing the tiny-input XLA
    # fast path) so the kernel itself is exercised.
    B, S, D = 2, 8, 32
    SEQ_LEN = 16  # buffer length >= S, as in the module constructor
    x1 = jax.random.normal(jax.random.PRNGKey(0), (B, S, D), jnp.float32)
    pe1 = make_pe(SEQ_LEN, D)
    ref1 = jax.block_until_ready(ref_forward(x1, pe1))
    out1 = jax.block_until_ready(positional_encoding(x1, pe1, force_pallas=True))
    np.testing.assert_allclose(np.asarray(out1), np.asarray(ref1), rtol=1e-6, atol=1e-6)

    # Case 2: lane-aligned d_model (128) -> direct (B, S, D) path, no reshape.
    B2, S2, D2 = 2, 16, 128
    x2 = jax.random.normal(jax.random.PRNGKey(1), (B2, S2, D2), jnp.float32)
    pe2 = make_pe(S2, D2)
    ref2 = jax.block_until_ready(ref_forward(x2, pe2))
    out2 = jax.block_until_ready(positional_encoding(x2, pe2, force_pallas=True))
    np.testing.assert_allclose(np.asarray(out2), np.asarray(ref2), rtol=1e-6, atol=1e-6)

    # Case 3: tiny-input fast path (plain fused XLA add).
    out3 = jax.block_until_ready(positional_encoding(x1, pe1))
    np.testing.assert_allclose(np.asarray(out3), np.asarray(ref1), rtol=1e-6, atol=1e-6)

    print("KERNEL_OK")
</pallas_src>

<mosaic_0001>
module attributes {stable_mosaic.version = 11 : i64} {
  func.func @pos_enc_kernel(%arg0: i32, %arg1: i32, %arg2: memref<2x256xf32, #tpu.memory_space<vmem>>, %arg3: memref<1x256xf32, #tpu.memory_space<vmem>>, %arg4: memref<2x256xf32, #tpu.memory_space<vmem>>) attributes {dimension_semantics = [#tpu.dimension_semantics<parallel>, #tpu.dimension_semantics<parallel>], iteration_bounds = array<i64: 1, 1>, scalar_prefetch = 0 : i64, scratch_operands = 0 : i64, tpu.core_type = #tpu.core_type<tc>, window_params = [{transform_indices = @transform_0, window_bounds = array<i64: 2, 256>}, {transform_indices = @transform_1, window_bounds = array<i64: 1, 256>}, {transform_indices = @transform_2, window_bounds = array<i64: 2, 256>}]} {
    %c0 = arith.constant 0 : index
    %c0_0 = arith.constant 0 : index
    %0 = vector.load %arg2[%c0, %c0_0] : memref<2x256xf32, #tpu.memory_space<vmem>>, vector<2x256xf32>
    %c0_1 = arith.constant 0 : index
    %c0_2 = arith.constant 0 : index
    %1 = vector.load %arg3[%c0_1, %c0_2] : memref<1x256xf32, #tpu.memory_space<vmem>>, vector<1x256xf32>
    %2 = vector.broadcast %1 : vector<1x256xf32> to vector<2x256xf32>
    %3 = arith.addf %0, %2 : vector<2x256xf32>
    %c0_3 = arith.constant 0 : index
    %c0_4 = arith.constant 0 : index
    %4 = vector.load %arg4[%c0_3, %c0_4] : memref<2x256xf32, #tpu.memory_space<vmem>>, vector<2x256xf32>
    tpu.vector_store %arg4[%c0_3, %c0_4], %3 {strides = array<i32>} : memref<2x256xf32, #tpu.memory_space<vmem>>, vector<2x256xf32>,
    return
  }
  func.func @transform_0(%arg0: i32, %arg1: i32) -> (i32, i32) {
    %c0_i32 = arith.constant 0 : i32
    return %arg0, %arg1 : i32, i32
  }
  func.func @transform_1(%arg0: i32, %arg1: i32) -> (i32, i32) {
    %c0_i32 = arith.constant 0 : i32
    %c0_i32_0 = arith.constant 0 : i32
    return %c0_i32, %arg1 : i32, i32
  }
  func.func @transform_2(%arg0: i32, %arg1: i32) -> (i32, i32) {
    %c0_i32 = arith.constant 0 : i32
    return %arg0, %arg1 : i32, i32
  }
}

</mosaic_0001>

<bundles_post_ra>
// kernel: tpu_custom_call.1
= control target key start
LH: loop header
LB: loop body
LE: loop exit
PB: predicated region body
PF: predicated region fallthrough
CT: control target
= control target key end

     0   :  { %7 = vsyncpa [#allocation3], 0  ;;  %s157_s0 = inlined_call_operand.hbm [shape: f32[2,256], index: 0, kind: input, shape index: {}, may-alias: {0,2}]   ;;  %s158_s1 = inlined_call_operand.vmem [shape: f32[1,256], index: 1, kind: input, shape index: {}]   ;;  %s159_s2 = inlined_call_operand.hbm [shape: f32[2,256], index: 2, kind: output, shape index: {}, may-alias: {0,2}]  }
   0x1   :  { %8 = vsyncpa [#allocation4], 0  ;;  %s112_s9 = smov [#allocation2]   ;;  %s64_s13 = scalar_lea.hbm %s157_s0, 64 }
   0x2   :  { %s15_s10 = sshll.u32 %s112_s9, 4  ;;  %p65_p0 = scmp.ne.s32.totalorder %s157_s0, %s64_s13  ;;  %s16_s10 = int_to_ptr.vmem [resolvable:$true] %s15_s10 }
   0x3   :  { %p68_p1 = scmp.lt.u32.totalorder %s64_s13, %s157_s0 }
   0x5   :  { %p70_p2 = pnand %p68_p1, %p65_p0 }
   0x7   :  { %73 = shalt.err (!%p70_p2)
}
   0x8   :  { %s74_s18 = scalar_lea.vmem %s16_s10, 64  ;;  %p79_p4 = scmp.lt.s32.totalorder %s16_s10, %s16_s10 }
   0x9   :  { %p75_p3 = scmp.ne.s32.totalorder %s16_s10, %s74_s18  ;;  %p80_p5 = scmp.lt.s32.totalorder %s74_s18, %s74_s18 }
   0xb   :  { %p81_p6 = por %p80_p5, %p79_p4 }
   0xd   :  { %p82_p7 = pnand %p81_p6, %p75_p3 }
   0xf   :  { %85 = shalt.err (!%p82_p7)
}
  0x10   :  { %18 = dma.hbm_to_vmem [thread:$0]  %s157_s0, 64, %s16_s10, [#allocation3]  }
  0x11   :  { %108 = dma.done.wait [#allocation3], 64  }
  0x12   :  { %109 = vsyncadd [#allocation3], 4294967232  ;;  %v27_v0 = vlaneseq  ;;  %v113_v1 = vmov 1983009808   ;;  %v25_v7 = vld [vmem:[%s158_s1] sm:$0x3] }
  0x13   :  { %v37_v2 = vunpack.c.l.s4 %v113_v1  ;;  %v24_v12 = vld [vmem:[#allocation2] sm:$0xf]  ;;  %s114_s23 = smov [#allocation5]  }
  0x14   :  { %v28_v3 = vshrl.u32 %v27_v0, 7  ;;  %s52_s0 = sshll.u32 %s114_s23, 4  ;;  %s53_s0 = int_to_ptr.vmem [resolvable:$true] %s52_s0 }
  0x15   :  { %v38_v6 = vunpack.c.0.s8 %v37_v2  ;;  %s86_s24 = scalar_lea.vmem %s53_s0, 64  ;;  %p91_p9 = scmp.lt.s32.totalorder %s53_s0, %s53_s0 }
  0x16   :  { %v29_v4 = vsub.s32 0, %v28_v3  ;;  %v33_v5 = vsub.s32 1, %v28_v3  ;;  %p87_p8 = scmp.ne.s32.totalorder %s53_s0, %s86_s24  ;;  %p92_p10 = scmp.lt.s32.totalorder %s86_s24, %s86_s24 }
  0x17   :  { %v41_v10 = vsub.s32 %v38_v6, %v28_v3 }
  0x18   :  { %v30_v8 = vrot.slane %v25_v7, %v29_v4  ;;  %v34_v9 = vrot.slane %v25_v7, %v33_v5  ;;  %p93_p11 = por %p92_p10, %p91_p9 }
  0x1a   :  { %v35_v11 = vcombine.low %v30_v8, %v34_v9  ;;  %p94_p12 = pnand %p93_p11, %p87_p8 }
  0x1c   :  { %v42_v13 = vrot.slane %v35_v11, %v41_v10 }
  0x1e   :  { %v44_v14 = vadd.f32 %v42_v13, %v24_v12 }
  0x20   :  { %45 = vst [vmem:[#allocation5] sm:$0xf] %v44_v14 }
  0x21   :  { %97 = shalt.err (!%p94_p12)
}
  0x22   :  { %s98_s26 = scalar_lea.hbm %s159_s2, 64 }
  0x23   :  { %p99_p13 = scmp.ne.s32.totalorder %s159_s2, %s98_s26  ;;  %p102_p0 = scmp.lt.u32.totalorder %s98_s26, %s159_s2 }
  0x25   :  { %p104_p1 = pnand %p102_p0, %p99_p13 }
  0x27   :  { %107 = shalt.err (!%p104_p1)
}
  0x28   :  { %55 = dma.vmem_to_hbm [thread:$0]  %s53_s0, 64, %s159_s2, [#allocation4]  }
  0x29   :  { %110 = dma.done.wait [#allocation4], 64  }
  0x2a   :  { %111 = vsyncadd [#allocation4], 4294967232 }
  0x2b   :  { %59 = vsyncpa [#allocation3], 1 }
  0x2c   :  { %60 = vsyncpa [#allocation4], 1 }

</bundles_post_ra>
